<compile_context>
chip_gen: v5e
topology: v5e:2x2
jax: 0.10.0
libtpu: 0.0.40
codegen_flags: <defaults>
</compile_context>

<pallas_src>
import jax
import jax.numpy as jnp
from jax.experimental import pallas as pl
from jax.experimental.pallas import tpu as pltpu

_LANES = 128


def _round_up(x, m):
    return ((x + m - 1) // m) * m


def _pnn_loss_kernel(mean_ref, logvar_ref, tgt_ref, out_ref):
    step = pl.program_id(1)

    # Initialize this chunk's partial sum on its first reduction step.
    @pl.when(step == 0)
    def _():
        out_ref[0, 0] = jnp.float32(0.0)

    mean = mean_ref[...].astype(jnp.float32)
    logvar = logvar_ref[...].astype(jnp.float32)
    tgt = tgt_ref[...].astype(jnp.float32)

    # Fused loss term; zero-padded elements contribute exactly 0.
    fused = jnp.square(mean - tgt) * jnp.exp(-logvar) + logvar

    out_ref[0, 0] += jnp.sum(fused)


def pnn_loss_gaussian(mean, logvar, targets, *, tile_rows=1024, num_chunks=2):
    """Pallas implementation of PNNLoss_Gaussian.forward for (N, D) inputs.

    Note: the mean-of-means == overall-mean simplification relies on the last
    dim D being identical for every row (true for this module).
    """
    assert mean.shape == logvar.shape == targets.shape
    assert mean.ndim == 2  # TODO(synk): extend to batched (..., N, D) inputs if needed.

    n_elems = mean.shape[0] * mean.shape[1]

    # Lane-dense layout: flatten to rows of 128 lanes, pad rows to the tiling.
    rows = -(-n_elems // _LANES)
    tile = _round_up(min(tile_rows, _round_up(rows, 8)), 8)
    steps = -(-rows // tile)
    if steps < num_chunks:
        num_chunks = 1
    steps_per_chunk = -(-steps // num_chunks)
    padded_rows = num_chunks * steps_per_chunk * tile
    pad = padded_rows * _LANES - n_elems

    def prep(x):
        # Keep native dtype through HBM; upcast happens inside the kernel.
        x = x.reshape(-1)
        x = jnp.pad(x, (0, pad))  # zeros contribute 0 to the fused sum
        return x.reshape(padded_rows, _LANES)

    m2, lv2, t2 = prep(mean), prep(logvar), prep(targets)

    in_spec = pl.BlockSpec(
        (tile, _LANES), lambda c, s: (c * steps_per_chunk + s, 0)
    )

    partials = pl.pallas_call(
        _pnn_loss_kernel,
        out_shape=jax.ShapeDtypeStruct((num_chunks, 1), jnp.float32),
        grid=(num_chunks, steps_per_chunk),
        in_specs=[in_spec, in_spec, in_spec],
        out_specs=pl.BlockSpec(
            (1, 1), lambda c, s: (c, 0), memory_space=pltpu.MemorySpace.SMEM
        ),
        compiler_params=pltpu.CompilerParams(
            dimension_semantics=("parallel", "arbitrary")
        ),
    )(m2, lv2, t2)

    # Combine per-chunk partial sums and apply the single division by N*D.
    return jnp.sum(partials) / jnp.float32(n_elems)


def _reference(mean, logvar, targets):
    inv_var = jnp.exp(-logvar)
    mse = jnp.mean(jnp.mean(jnp.square(mean - targets) * inv_var, axis=-1), axis=-1)
    var = jnp.mean(jnp.mean(logvar, axis=-1), axis=-1)
    return mse + var


if __name__ == "__main__":
    key = jax.random.PRNGKey(0)

    # 1) Small shapes matching the module defaults (D = len(idx) = 9).
    N, D = 8, 9
    k1, k2, k3, k4 = jax.random.split(key, 4)
    mean = jax.random.normal(k1, (N, D), dtype=jnp.float32)
    logvar = 0.5 * jax.random.normal(k2, (N, D), dtype=jnp.float32)
    targets = jax.random.normal(k3, (N, D), dtype=jnp.float32)

    loss = pnn_loss_gaussian(mean, logvar, targets)
    jax.block_until_ready(loss)
    ref = _reference(mean, logvar, targets)
    assert jnp.allclose(loss, ref, rtol=1e-5, atol=1e-5), (loss, ref)

    # 2) Larger batch with a small tile to exercise the multi-step,
    #    multi-chunk grid reduction path.
    N2 = 2048
    ka, kb, kc = jax.random.split(k4, 3)
    mean2 = jax.random.normal(ka, (N2, D), dtype=jnp.float32)
    logvar2 = 0.5 * jax.random.normal(kb, (N2, D), dtype=jnp.float32)
    targets2 = jax.random.normal(kc, (N2, D), dtype=jnp.float32)

    loss2 = pnn_loss_gaussian(mean2, logvar2, targets2, tile_rows=8, num_chunks=2)
    jax.block_until_ready(loss2)
    ref2 = _reference(mean2, logvar2, targets2)
    assert jnp.allclose(loss2, ref2, rtol=1e-4, atol=1e-5), (loss2, ref2)

    print("KERNEL_OK")
</pallas_src>

<mosaic_0001>
module attributes {stable_mosaic.version = 11 : i64} {
  func.func @_pnn_loss_kernel(%arg0: i32, %arg1: i32, %arg2: memref<8x128xf32, #tpu.memory_space<vmem>>, %arg3: memref<8x128xf32, #tpu.memory_space<vmem>>, %arg4: memref<8x128xf32, #tpu.memory_space<vmem>>, %arg5: memref<1x1xf32, #tpu.memory_space<smem>>) attributes {dimension_semantics = [#tpu.dimension_semantics<parallel>, #tpu.dimension_semantics<arbitrary>], iteration_bounds = array<i64: 1, 1>, scalar_prefetch = 0 : i64, scratch_operands = 0 : i64, tpu.core_type = #tpu.core_type<tc>, window_params = [{transform_indices = @transform_0, window_bounds = array<i64: 8, 128>}, {transform_indices = @transform_1, window_bounds = array<i64: 8, 128>}, {transform_indices = @transform_2, window_bounds = array<i64: 8, 128>}, {transform_indices = @transform_3, window_bounds = array<i64: 1, 1>}]} {
    %c0_i32 = arith.constant 0 : i32
    %0 = arith.cmpi eq, %arg1, %c0_i32 : i32
    %1 = arith.extui %0 : i1 to i32
    %c0_i32_0 = arith.constant 0 : i32
    %2 = arith.cmpi ne, %1, %c0_i32_0 : i32
    scf.if %2 {
      %cst_11 = arith.constant 0.000000e+00 : f32
      %c0_12 = arith.constant 0 : index
      %c0_13 = arith.constant 0 : index
      %20 = memref.load %arg5[%c0_12, %c0_13] : memref<1x1xf32, #tpu.memory_space<smem>>
      memref.store %cst_11, %arg5[%c0_12, %c0_13] : memref<1x1xf32, #tpu.memory_space<smem>>
    } else {
    }
    %c0 = arith.constant 0 : index
    %c0_1 = arith.constant 0 : index
    %3 = vector.load %arg2[%c0, %c0_1] : memref<8x128xf32, #tpu.memory_space<vmem>>, vector<8x128xf32>
    %c0_2 = arith.constant 0 : index
    %c0_3 = arith.constant 0 : index
    %4 = vector.load %arg3[%c0_2, %c0_3] : memref<8x128xf32, #tpu.memory_space<vmem>>, vector<8x128xf32>
    %c0_4 = arith.constant 0 : index
    %c0_5 = arith.constant 0 : index
    %5 = vector.load %arg4[%c0_4, %c0_5] : memref<8x128xf32, #tpu.memory_space<vmem>>, vector<8x128xf32>
    %6 = arith.subf %3, %5 : vector<8x128xf32>
    %7 = arith.mulf %6, %6 : vector<8x128xf32>
    %cst = arith.constant 0.000000e+00 : f32
    %8 = vector.broadcast %cst : f32 to vector<8x128xf32>
    %9 = arith.subf %8, %4 : vector<8x128xf32>
    %10 = math.exp %9 : vector<8x128xf32>
    %11 = arith.mulf %7, %10 : vector<8x128xf32>
    %12 = arith.addf %11, %4 : vector<8x128xf32>
    %c0_6 = arith.constant 0 : index
    %c0_7 = arith.constant 0 : index
    %13 = memref.load %arg5[%c0_6, %c0_7] : memref<1x1xf32, #tpu.memory_space<smem>>
    %14 = vector.shape_cast %12 : vector<8x128xf32> to vector<1x8x128xf32>
    %cst_8 = arith.constant dense<0.000000e+00> : vector<1xf32>
    %15 = vector.multi_reduction <add>, %14, %cst_8 [1, 2] : vector<1x8x128xf32> to vector<1xf32>
    %16 = vector.shape_cast %15 : vector<1xf32> to vector<1x1x1xf32>
    %17 = vector.extract %16[0, 0, 0] : f32 from vector<1x1x1xf32>
    %18 = arith.addf %13, %17 : f32
    %c0_9 = arith.constant 0 : index
    %c0_10 = arith.constant 0 : index
    %19 = memref.load %arg5[%c0_9, %c0_10] : memref<1x1xf32, #tpu.memory_space<smem>>
    memref.store %18, %arg5[%c0_9, %c0_10] : memref<1x1xf32, #tpu.memory_space<smem>>
    return
  }
  func.func @transform_0(%arg0: i32, %arg1: i32) -> (i32, i32) {
    %c1_i32 = arith.constant 1 : i32
    %0 = arith.muli %arg0, %c1_i32 : i32
    %1 = arith.addi %0, %arg1 : i32
    %c0_i32 = arith.constant 0 : i32
    %c0_i32_0 = arith.constant 0 : i32
    return %1, %c0_i32 : i32, i32
  }
  func.func @transform_1(%arg0: i32, %arg1: i32) -> (i32, i32) {
    %c1_i32 = arith.constant 1 : i32
    %0 = arith.muli %arg0, %c1_i32 : i32
    %1 = arith.addi %0, %arg1 : i32
    %c0_i32 = arith.constant 0 : i32
    %c0_i32_0 = arith.constant 0 : i32
    return %1, %c0_i32 : i32, i32
  }
  func.func @transform_2(%arg0: i32, %arg1: i32) -> (i32, i32) {
    %c1_i32 = arith.constant 1 : i32
    %0 = arith.muli %arg0, %c1_i32 : i32
    %1 = arith.addi %0, %arg1 : i32
    %c0_i32 = arith.constant 0 : i32
    %c0_i32_0 = arith.constant 0 : i32
    return %1, %c0_i32 : i32, i32
  }
  func.func @transform_3(%arg0: i32, %arg1: i32) -> (i32, i32) {
    %c0_i32 = arith.constant 0 : i32
    %c0_i32_0 = arith.constant 0 : i32
    return %arg0, %c0_i32 : i32, i32
  }
}

</mosaic_0001>

<bundles_post_ra>
// kernel: tpu_custom_call.1
= control target key start
LH: loop header
LB: loop body
LE: loop exit
PB: predicated region body
PF: predicated region fallthrough
CT: control target
= control target key end

     0   :  { %8 = vsyncpa [#allocation3], 0  ;;  %s249_s0 = inlined_call_operand.hbm [shape: f32[8,128], index: 0, kind: input, shape index: {}]   ;;  %s250_s1 = inlined_call_operand.hbm [shape: f32[8,128], index: 1, kind: input, shape index: {}]   ;;  %s251_s2 = inlined_call_operand.hbm [shape: f32[8,128], index: 2, kind: input, shape index: {}]   ;;  %s252_s3 = inlined_call_operand.hbm [shape: f32[1,1], index: 3, kind: output, shape index: {}]  }
   0x1   :  { %9 = vsyncpa [#allocation6], 0  ;;  %s33_s14 = sshll.u32 %s250_s1, 4  ;;  %s34_s14 = int_to_ptr.hbm [resolvable:$true] %s33_s14 }
   0x2   :  { %10 = vsyncpa [#allocation4], 0  ;;  %s213_s15 = smov [#allocation5]   ;;  %s19_s19 = sshll.u32 %s249_s0, 4  ;;  %s20_s19 = int_to_ptr.hbm [resolvable:$true] %s19_s19 }
   0x3   :  { %s35_s16 = sshll.u32 %s213_s15, 4  ;;  %s214_s20 = smov [#allocation2]   ;;  %s36_s16 = int_to_ptr.vmem [resolvable:$true] %s35_s16 }
   0x4   :  { %38 = dma.hbm_to_vmem [thread:$0]  %s34_s14, 128, %s36_s16, [#allocation6]  }
   0x5   :  { %s21_s21 = sshll.u32 %s214_s20, 4  ;;  %s47_s24 = sshll.u32 %s251_s2, 4  ;;  %s22_s21 = int_to_ptr.vmem [resolvable:$true] %s21_s21  ;;  %s48_s24 = int_to_ptr.hbm [resolvable:$true] %s47_s24 }
   0x6   :  { %24 = dma.hbm_to_vmem [thread:$0]  %s20_s19, 128, %s22_s21, [#allocation3]  }
   0x7   :  { %s215_s1 = smov [#allocation7]  }
   0x8   :  { %s49_s25 = sshll.u32 %s215_s1, 4  ;;  %s50_s25 = int_to_ptr.vmem [resolvable:$true] %s49_s25 }
   0x9   :  { %52 = dma.hbm_to_vmem [thread:$0]  %s48_s24, 128, %s50_s25, [#allocation6]  }
   0xa   :  { %207 = dma.done.wait [#allocation3], 128  }
   0xb   :  { %208 = vsyncadd [#allocation3], 4294967168 }
   0xc   :  { %209 = dma.done.wait [#allocation6], 256  }
   0xd   :  { %210 = vsyncadd [#allocation6], 4294967040  ;;  %v75_v0 = vld [vmem:[#allocation5] sm:$0xff]  ;;  %v74_v1 = vld [vmem:[#allocation2] sm:$0xff]  ;;  %s102_s26 = sshll.u32 %s252_s3, 4  ;;  %s216_s28 = smov [#allocation8]   ;;  %s103_s26 = int_to_ptr.hbm [resolvable:$true] %s102_s26 }
   0xe   :  { %v76_v2 = vld [vmem:[#allocation7] sm:$0xff]  ;;  %v79_v3 = vsub.f32 0.0, %v75_v0 }
   0xf   :  { %v77_v5 = vsub.f32 %v74_v1, %v76_v2 }
  0x10   :  { %v80_v4 = vmul.f32 1.442695, %v79_v3 }
  0x11   :  { %v78_v6 = vmul.f32 %v77_v5, %v77_v5 }
  0x12   :  { %121 = vpow2.f32 %v80_v4 }
  0x18   :  { %v122_v7 = vpop.eup %121 }
  0x19   :  { %v82_v8 = vmul.f32 %v122_v7, %v78_v6 }
  0x1b   :  { %v83_v9 = vadd.f32 %v82_v8, %v75_v0 }
  0x1d   :  { %85 = vadd.xlane.f32.xlu0 %v83_v9 }
  0x90   :  { %v86_v10 = vpop.xlane.xlu0 %85 }
  0x91   :  { %v87_v11 = vrot.slane %v86_v10, 4 }
  0x93   :  { %v88_v12 = vadd.f32 %v87_v11, %v86_v10 }
  0x95   :  { %v89_v13 = vrot.slane %v88_v12, 2 }
  0x97   :  { %v90_v14 = vadd.f32 %v89_v13, %v88_v12 }
  0x99   :  { %v91_v15 = vrot.slane %v90_v14, 1 }
  0x9b   :  { %v92_v16 = vadd.f32 %v91_v15, %v90_v14 }
  0x9d   :  { %114 = vpush %v92_v16 }
  0xce   :  { %s115_s27 = spop %114 }
  0xcf   :  { %96 = sst [smem:[#allocation8]] %s115_s27 }
  0xd0   :  { %105 = dma.smem_to_hbm %s216_s28, 16, %s103_s26, [#allocation4]  }
  0xd1   :  { %211 = dma.done.wait [#allocation4], 16  }
  0xd2   :  { %212 = vsyncadd [#allocation4], 4294967280 }
  0xd3   :  { %110 = sfence }
  0xd4   :  { %111 = vsyncpa [#allocation3], 1 }
  0xd5   :  { %112 = vsyncpa [#allocation6], 1 }
  0xd6   :  { %113 = vsyncpa [#allocation4], 1 }

</bundles_post_ra>
